<compile_context>
chip_gen: v6e
topology: v6e:2x2x1
jax: 0.10.0
libtpu: 0.0.40
codegen_flags: <defaults>
</compile_context>

<pallas_src>
import jax
import jax.numpy as jnp
from jax.experimental import pallas as pl
from jax.experimental.pallas import tpu as pltpu


def _chomp_copy_kernel(x_ref, o_ref):
    # Pure VMEM tile copy: (RT, TL) -> (RT, TL).  Ragged edge tiles (rows or
    # lanes) are handled by Pallas' masked output writeback, so any chomped /
    # out-of-bounds garbage read into the input tile is never observable.
    o_ref[...] = x_ref[...]


_ROW_TILE_MAX = 512              # sublane tile cap (multiple of 8)
_TARGET_BYTES = 2 * 1024 * 1024  # ~2 MiB per VMEM buffer per grid step


def _round_up(x: int, m: int) -> int:
    return (x + m - 1) // m * m


def chomp1d(x: jax.Array, chomp_size: int) -> jax.Array:
    """Equivalent of PyTorch Chomp1d(chomp_size)(x) for x of shape (N, C, L)."""
    # TODO(synk): in a real TCN this trim should be folded into the consuming
    # conv kernel's index_map (read only the first L - chomp_size steps); a
    # standalone copy can at best tie XLA's native prefix slice.
    n, c, l = x.shape
    l_out = l - chomp_size
    assert 0 < l_out <= l, "chomp_size must be smaller than the length axis"

    if l_out < 128:
        # Sub-lane-width outputs force masked vst.msk partial stores and the
        # fixed pallas_call launch overhead dwarfs the tiny copy; XLA's native
        # slice is strictly better here.
        return jax.lax.slice(x, (0, 0, 0), (n, c, l_out))

    # Flatten (N, C, L) -> (N*C, L): free reshape that turns batch/channels
    # into sublanes so every grid step moves a large lane-dense rectangle.
    rows = n * c
    x2 = x.reshape(rows, l)

    itemsize = jnp.dtype(x.dtype).itemsize

    # Row (sublane) tile: full extent when small, else a 512-row tile
    # (multiple of 8 -> satisfies the (8, 128) constraint; edge rows masked).
    rt = rows if rows <= _ROW_TILE_MAX else _ROW_TILE_MAX

    # Lane tile: multiple of 128, sized toward ~2 MiB per buffer, but never
    # wider than the (rounded-up) kept prefix.
    want_tl = max(128, _TARGET_BYTES // (rt * itemsize))
    tl = min(_round_up(l_out, 128), _round_up(want_tl, 128))

    # Row-tile axis first so the v7x megacore shards the larger extent.
    grid = (pl.cdiv(rows, rt), pl.cdiv(l_out, tl))

    cost = pl.CostEstimate(
        flops=0,
        transcendentals=0,
        # Approximate read + write of the kept prefix (edge-tile over-read is
        # negligible); advisory only.
        bytes_accessed=2 * rows * l_out * itemsize,
    )

    out2 = pl.pallas_call(
        _chomp_copy_kernel,
        out_shape=jax.ShapeDtypeStruct((rows, l_out), x.dtype),
        grid_spec=pltpu.PrefetchScalarGridSpec(
            num_scalar_prefetch=0,
            grid=grid,
            in_specs=[pl.BlockSpec((rt, tl), lambda ri, lj: (ri, lj))],
            out_specs=pl.BlockSpec((rt, tl), lambda ri, lj: (ri, lj)),
        ),
        compiler_params=pltpu.CompilerParams(
            dimension_semantics=("parallel", "parallel"),
        ),
        cost_estimate=cost,
    )(x2)

    return out2.reshape(n, c, l_out)


if __name__ == "__main__":
    key = jax.random.PRNGKey(0)
    k1, k2, k3, k4 = jax.random.split(key, 4)

    # 1) Small shape matching the module convention (L_out < 128 -> native
    #    prefix slice path).
    x1 = jax.random.normal(k1, (2, 4, 16), dtype=jnp.float32)
    out1 = jax.block_until_ready(chomp1d(x1, 4))
    ref1 = x1[:, :, :-4]
    assert out1.shape == ref1.shape == (2, 4, 12)
    assert out1.dtype == x1.dtype
    assert jnp.array_equal(out1, ref1)

    # 2) Pallas path, exact lane tile (L_out = 1024, single 16x1024 block).
    x2 = jax.random.normal(k2, (2, 8, 1028), dtype=jnp.float32)
    out2 = jax.block_until_ready(chomp1d(x2, 4))
    ref2 = x2[:, :, :-4]
    assert out2.shape == ref2.shape == (2, 8, 1024)
    assert jnp.array_equal(out2, ref2)

    # 3) Pallas path, L_out = 640 (multiple of 128, tile fits inside input).
    x3 = jax.random.normal(k3, (2, 8, 650), dtype=jnp.float32)
    out3 = jax.block_until_ready(chomp1d(x3, 10))
    ref3 = x3[:, :, :-10]
    assert out3.shape == ref3.shape == (2, 8, 640)
    assert jnp.array_equal(out3, ref3)

    # 4) Pallas path with a ragged (masked) lane-edge tile: L_out = 690,
    #    tile width 768 extends past both the kept prefix and the input end.
    x4 = jax.random.normal(k4, (2, 8, 700), dtype=jnp.float32)
    out4 = jax.block_until_ready(chomp1d(x4, 10))
    ref4 = x4[:, :, :-10]
    assert out4.shape == ref4.shape == (2, 8, 690)
    assert jnp.array_equal(out4, ref4)

    print("KERNEL_OK")
</pallas_src>

<mosaic_0001>
module attributes {stable_mosaic.version = 11 : i64} {
  func.func @_chomp_copy_kernel(%arg0: i32, %arg1: i32, %arg2: memref<16x1024xf32, #tpu.memory_space<vmem>>, %arg3: memref<16x1024xf32, #tpu.memory_space<vmem>>) attributes {dimension_semantics = [#tpu.dimension_semantics<parallel>, #tpu.dimension_semantics<parallel>], iteration_bounds = array<i64: 1, 1>, scalar_prefetch = 0 : i64, scratch_operands = 0 : i64, tpu.core_type = #tpu.core_type<tc>, window_params = [{transform_indices = @transform_0, window_bounds = array<i64: 16, 1024>}, {transform_indices = @transform_1, window_bounds = array<i64: 16, 1024>}]} {
    %c0 = arith.constant 0 : index
    %c0_0 = arith.constant 0 : index
    %0 = vector.load %arg2[%c0, %c0_0] : memref<16x1024xf32, #tpu.memory_space<vmem>>, vector<16x1024xf32>
    %c0_1 = arith.constant 0 : index
    %c0_2 = arith.constant 0 : index
    %1 = vector.load %arg3[%c0_1, %c0_2] : memref<16x1024xf32, #tpu.memory_space<vmem>>, vector<16x1024xf32>
    tpu.vector_store %arg3[%c0_1, %c0_2], %0 {strides = array<i32>} : memref<16x1024xf32, #tpu.memory_space<vmem>>, vector<16x1024xf32>,
    return
  }
  func.func @transform_0(%arg0: i32, %arg1: i32) -> (i32, i32) {
    %c0_i32 = arith.constant 0 : i32
    return %arg0, %arg1 : i32, i32
  }
  func.func @transform_1(%arg0: i32, %arg1: i32) -> (i32, i32) {
    %c0_i32 = arith.constant 0 : i32
    return %arg0, %arg1 : i32, i32
  }
}

</mosaic_0001>

<bundles_post_ra>
// kernel: tpu_custom_call.1
= control target key start
LH: loop header
LB: loop body
LE: loop exit
PB: predicated region body
PF: predicated region fallthrough
CT: control target
= control target key end

     0   :  { %6 = vsyncpa [#allocation3], 0  ;;  %s147_s0 = inlined_call_operand.hbm [shape: f32[16,1028], index: 0, kind: input, shape index: {}]   ;;  %s148_s1 = inlined_call_operand.hbm [shape: f32[16,1024], index: 1, kind: output, shape index: {}]  }
   0x1   :  { %7 = vsyncpa [#allocation4], 0  ;;  %s121_s6 = smov [#allocation2]  }
   0x2   :  { %s13_s7 = sshll.u32 %s121_s6, 4  ;;  %s14_s7 = int_to_ptr.vmem [resolvable:$true] %s13_s7 }
   0x3   :  { %s85_s8 = scalar_lea.vmem %s14_s7, 2048  ;;  %p90_p1 = scmp.lt.s32.totalorder %s14_s7, %s14_s7 }
   0x4   :  { %p86_p0 = scmp.ne.s32.totalorder %s14_s7, %s85_s8  ;;  %p91_p2 = scmp.lt.s32.totalorder %s85_s8, %s85_s8 }
   0x6   :  { %p92_p3 = por %p91_p2, %p90_p1 }
   0x8   :  { %p93_p4 = pnand %p92_p3, %p86_p0 }
   0xa   :  { %96 = shalt.err (!%p93_p4)
}
   0xb   :  { %s122_s9 = smov 1152   ;;  %s123_s10 = smov 1024  }
   0xc   :  { %s124_s11 = smov 64  }
   0xd   :  { %19 = dma.hbm_to_vmem [thread:$0]  %s147_s0, 2048, %s14_s7, [#allocation3], %s122_s9, %s123_s10, %s124_s11  }
   0xe   :  { %117 = dma.done.wait [#allocation3], 2048  }
   0xf   :  { %118 = vsyncadd [#allocation3], 4294965248  ;;  %v23_v0 = vld [vmem:[#allocation2] sm:$0xff]  ;;  %v24_v1 = vld [vmem:[#allocation2 + $0x8] sm:$0xff]  ;;  %s125_s14 = smov [#allocation5]  }
  0x10   :  { %v25_v2 = vld [vmem:[#allocation2 + $0x10] sm:$0xff]  ;;  %39 = vst [vmem:[#allocation5] sm:$0xff] %v23_v0  ;;  %40 = vst [vmem:[#allocation5 + $0x8] sm:$0xff] %v24_v1  ;;  %v26_v3 = vld [vmem:[#allocation2 + $0x18] sm:$0xff]  ;;  %s60_s15 = sshll.u32 %s125_s14, 4  ;;  %s61_s15 = int_to_ptr.vmem [resolvable:$true] %s60_s15 }
  0x11   :  { %41 = vst [vmem:[#allocation5 + $0x10] sm:$0xff] %v25_v2  ;;  %v27_v4 = vld [vmem:[#allocation2 + $0x20] sm:$0xff]  ;;  %v28_v5 = vld [vmem:[#allocation2 + $0x28] sm:$0xff]  ;;  %42 = vst [vmem:[#allocation5 + $0x18] sm:$0xff] %v26_v3  ;;  %s97_s0 = scalar_lea.vmem %s61_s15, 2048  ;;  %p102_p6 = scmp.lt.s32.totalorder %s61_s15, %s61_s15 }
  0x12   :  { %43 = vst [vmem:[#allocation5 + $0x20] sm:$0xff] %v27_v4  ;;  %44 = vst [vmem:[#allocation5 + $0x28] sm:$0xff] %v28_v5  ;;  %v29_v6 = vld [vmem:[#allocation2 + $0x30] sm:$0xff]  ;;  %v30_v7 = vld [vmem:[#allocation2 + $0x38] sm:$0xff]  ;;  %p98_p5 = scmp.ne.s32.totalorder %s61_s15, %s97_s0  ;;  %p103_p7 = scmp.lt.s32.totalorder %s97_s0, %s97_s0 }
  0x13   :  { %v31_v8 = vld [vmem:[#allocation2 + $0x40] sm:$0xff]  ;;  %45 = vst [vmem:[#allocation5 + $0x30] sm:$0xff] %v29_v6  ;;  %46 = vst [vmem:[#allocation5 + $0x38] sm:$0xff] %v30_v7  ;;  %v32_v9 = vld [vmem:[#allocation2 + $0x48] sm:$0xff] }
  0x14   :  { %47 = vst [vmem:[#allocation5 + $0x40] sm:$0xff] %v31_v8  ;;  %v33_v10 = vld [vmem:[#allocation2 + $0x50] sm:$0xff]  ;;  %v34_v11 = vld [vmem:[#allocation2 + $0x58] sm:$0xff]  ;;  %48 = vst [vmem:[#allocation5 + $0x48] sm:$0xff] %v32_v9  ;;  %p104_p8 = por %p103_p7, %p102_p6 }
  0x15   :  { %49 = vst [vmem:[#allocation5 + $0x50] sm:$0xff] %v33_v10  ;;  %50 = vst [vmem:[#allocation5 + $0x58] sm:$0xff] %v34_v11  ;;  %v35_v12 = vld [vmem:[#allocation2 + $0x60] sm:$0xff]  ;;  %v36_v13 = vld [vmem:[#allocation2 + $0x68] sm:$0xff] }
  0x16   :  { %v37_v14 = vld [vmem:[#allocation2 + $0x70] sm:$0xff]  ;;  %51 = vst [vmem:[#allocation5 + $0x60] sm:$0xff] %v35_v12  ;;  %52 = vst [vmem:[#allocation5 + $0x68] sm:$0xff] %v36_v13  ;;  %v38_v15 = vld [vmem:[#allocation2 + $0x78] sm:$0xff]  ;;  %p105_p9 = pnand %p104_p8, %p98_p5 }
  0x17   :  { %53 = vst [vmem:[#allocation5 + $0x70] sm:$0xff] %v37_v14  ;;  %54 = vst [vmem:[#allocation5 + $0x78] sm:$0xff] %v38_v15 }
  0x18   :  { %108 = shalt.err (!%p105_p9)
}
  0x19   :  { %66 = dma.vmem_to_hbm [thread:$0]  %s61_s15, 2048, %s148_s1, [#allocation4], %s123_s10, %s123_s10, %s124_s11  }
  0x1a   :  { %119 = dma.done.wait [#allocation4], 2048  }
  0x1b   :  { %120 = vsyncadd [#allocation4], 4294965248 }
  0x1c   :  { %70 = vsyncpa [#allocation3], 1 }
  0x1d   :  { %71 = vsyncpa [#allocation4], 1 }

</bundles_post_ra>
